<compile_context>
chip_gen: v5e
topology: v5e:2x2
jax: 0.10.0
libtpu: 0.0.40
codegen_flags: <defaults>
</compile_context>

<pallas_src>
import functools

import jax
import jax.numpy as jnp
from jax.experimental import pallas as pl
from jax.experimental.pallas import tpu as pltpu

EMBED_DIM = 16                      # embedding dim used in the demo
_LANES = 128
_VMEM_LIMIT = 32 * 1024 * 1024      # explicit scoped-VMEM budget (safe on v5e/v6e/v7x)
_BLOCK_BYTES = 4 * 1024 * 1024      # per-array per-buffer VMEM target (~16 MiB total)


def _round_up(x, m):
    return -(-x // m) * m


# --------------------------------------------------------------------------- #
# Per-node L2 normalisation  (== F.normalize(h, p=2, dim=-1, eps=1e-12))
# --------------------------------------------------------------------------- #
def _l2_normalize_kernel(x_ref, o_ref):
    x = x_ref[...].astype(jnp.float32)
    norm = jnp.sqrt(jnp.sum(x * x, axis=-1, keepdims=True))
    o_ref[...] = x / jnp.maximum(norm, 1e-12)


@jax.jit
def l2_normalize_nodes(x):
    """Row-wise L2 normalisation of an (N, D) node table via Pallas."""
    n, d = x.shape
    if n == 0:
        return jnp.zeros((0, d), jnp.float32)
    max_rows = max(8, min(4096, ((_BLOCK_BYTES // 4) // max(d, 1)) // 8 * 8))
    tile_n = min(max_rows, _round_up(n, 8))
    n_pad = _round_up(n, tile_n)
    if n_pad != n:                       # tiny, per-node only (never per-edge)
        x = jnp.pad(x, ((0, n_pad - n), (0, 0)))
    out = pl.pallas_call(
        _l2_normalize_kernel,
        out_shape=jax.ShapeDtypeStruct((n_pad, d), jnp.float32),
        grid=(n_pad // tile_n,),
        in_specs=[pl.BlockSpec((tile_n, d), lambda i: (i, 0))],
        out_specs=pl.BlockSpec((tile_n, d), lambda i: (i, 0)),
        compiler_params=pltpu.CompilerParams(
            dimension_semantics=("parallel",),
            vmem_limit_bytes=_VMEM_LIMIT),
    )(x)
    return out[:n]


# --------------------------------------------------------------------------- #
# Per-edge u_dot_v on lane-packed, pre-normalised embeddings
# --------------------------------------------------------------------------- #
def _packed_dot_kernel(h_ref, t_ref, o_ref, *, dim: int, epr: int):
    """h_ref/t_ref: (R, 128) f32, `epr` edges per row, `dim` lanes per edge.
    o_ref: (R, epr) f32, column s = cosine of edge (row * epr + s)."""
    h = h_ref[...].astype(jnp.float32)
    t = t_ref[...].astype(jnp.float32)
    p = h * t                                            # per-lane products (VPU)

    # 0/1 selector: column c sums the lanes of edge-slot (c % epr).
    lane = jax.lax.broadcasted_iota(jnp.int32, (_LANES, _LANES), 0)
    col = jax.lax.broadcasted_iota(jnp.int32, (_LANES, _LANES), 1)
    sel = jnp.where(lane // dim == col % epr, 1.0, 0.0).astype(jnp.bfloat16)

    # Exact f32 segment-sum on the MXU: bf16 hi/mid/lo split (hi+mid+lo == p to
    # ~2^-24 rel.), each contracted against the 0/1 selector with f32 accumulation.
    hi = p.astype(jnp.bfloat16)
    r1 = p - hi.astype(jnp.float32)
    mid = r1.astype(jnp.bfloat16)
    lo = (r1 - mid.astype(jnp.float32)).astype(jnp.bfloat16)

    dot = (jnp.dot(hi, sel, preferred_element_type=jnp.float32)
           + jnp.dot(mid, sel, preferred_element_type=jnp.float32)
           + jnp.dot(lo, sel, preferred_element_type=jnp.float32))
    o_ref[...] = dot[:, :epr]


def _rowwise_dot_kernel(h_ref, t_ref, o_ref):
    """Fallback for D > 128 (already lane-dense in the natural layout)."""
    h = h_ref[...].astype(jnp.float32)
    t = t_ref[...].astype(jnp.float32)
    o_ref[...] = jnp.sum(h * t, axis=-1, keepdims=True)


def _pad_indices(idx, pad):
    idx = idx.astype(jnp.int32)
    if pad:
        idx = jnp.concatenate([idx, jnp.zeros((pad,), jnp.int32)])
    return idx


def _split_steps(e_unit, unit, max_tile, e):
    """Pick (tile, num_steps): big tiles, balanced, >=2 steps only when it pays."""
    num_steps = pl.cdiv(e_unit, max_tile)
    if num_steps == 1 and e >= 4096 and e_unit > unit:
        num_steps = 2                    # v7x megacore; ~0.35us overhead elsewhere
    tile = _round_up(pl.cdiv(e_unit, num_steps), unit)
    return tile, num_steps


@jax.jit
def edge_cosine(norm_heads_tbl, norm_tails_tbl, src_nid, dst_nid):
    """u_dot_v over pre-normalised node tables -> (E, 1) f32 per-edge cosine."""
    e = src_nid.shape[0]
    d = norm_heads_tbl.shape[-1]
    if e == 0:
        return jnp.zeros((0, 1), jnp.float32)

    if d <= _LANES:
        # ---- packed path: EPR edges per fully dense 128-lane row ----
        d_pad = max(1, pl.next_power_of_2(d))        # power of two -> divides 128
        epr = _LANES // d_pad
        unit = epr * 8                               # 8 sublanes worth of packed rows
        max_tile = max(unit, ((_BLOCK_BYTES // (d_pad * 4)) // unit) * unit)
        e_unit = _round_up(e, unit)
        tile, num_steps = _split_steps(e_unit, unit, max_tile, e)
        e_pad = tile * num_steps

        src = _pad_indices(src_nid, e_pad - e)       # pad indices, NOT embeddings
        dst = _pad_indices(dst_nid, e_pad - e)

        heads_tbl, tails_tbl = norm_heads_tbl, norm_tails_tbl
        if d_pad != d:                               # per-node zero dims: exact no-op
            heads_tbl = jnp.pad(heads_tbl, ((0, 0), (0, d_pad - d)))
            tails_tbl = jnp.pad(tails_tbl, ((0, 0), (0, d_pad - d)))

        heads = jnp.take(heads_tbl, src, axis=0)     # (e_pad, d_pad)
        tails = jnp.take(tails_tbl, dst, axis=0)
        heads = heads.reshape(e_pad // epr, _LANES)  # zero-copy packing
        tails = tails.reshape(e_pad // epr, _LANES)

        rows = tile // epr                           # multiple of 8 by construction
        kernel = functools.partial(_packed_dot_kernel, dim=d_pad, epr=epr)
        edge_spec = pl.BlockSpec((rows, _LANES), lambda i: (i, 0))
        out = pl.pallas_call(
            kernel,
            out_shape=jax.ShapeDtypeStruct((e_pad // epr, epr), jnp.float32),
            grid=(num_steps,),
            in_specs=[edge_spec, edge_spec],
            out_specs=pl.BlockSpec((rows, epr), lambda i: (i, 0)),
            compiler_params=pltpu.CompilerParams(
                dimension_semantics=("parallel",),
                vmem_limit_bytes=_VMEM_LIMIT),
        )(heads, tails)
        return out.reshape(e_pad, 1)[:e]             # row-major == edge order

    # ---- fallback path: D > 128 is already lane-dense in the natural layout ----
    max_tile = max(8, min(4096, ((_BLOCK_BYTES // (d * 4)) // 8) * 8))
    e_unit = _round_up(e, 8)
    tile, num_steps = _split_steps(e_unit, 8, max_tile, e)
    e_pad = tile * num_steps
    src = _pad_indices(src_nid, e_pad - e)
    dst = _pad_indices(dst_nid, e_pad - e)
    heads = jnp.take(norm_heads_tbl, src, axis=0)
    tails = jnp.take(norm_tails_tbl, dst, axis=0)
    spec = pl.BlockSpec((tile, d), lambda i: (i, 0))
    out = pl.pallas_call(
        _rowwise_dot_kernel,
        out_shape=jax.ShapeDtypeStruct((e_pad, 1), jnp.float32),
        grid=(num_steps,),
        in_specs=[spec, spec],
        out_specs=pl.BlockSpec((tile, 1), lambda i: (i, 0)),
        compiler_params=pltpu.CompilerParams(
            dimension_semantics=("parallel",),
            vmem_limit_bytes=_VMEM_LIMIT),
    )(heads, tails)
    return out[:e]


def cosine_prediction(graph, h):
    """Emulates CosinePrediction.forward over a DGL-like hetero graph dict."""
    # F.normalize(h[ntype]) is per-node data; compute each table once and reuse.
    norm_h = {ntype: l2_normalize_nodes(x) for ntype, x in h.items()}
    ratings = {}
    for etype in graph["canonical_etypes"]:
        utype, _, vtype = etype
        # Mirrors the `try: ... except KeyError: pass` in the PyTorch module.
        if utype not in norm_h or vtype not in norm_h:
            continue
        src_nid, dst_nid = graph["edges"][etype]
        ratings[etype] = edge_cosine(norm_h[utype], norm_h[vtype], src_nid, dst_nid)
    return ratings


if __name__ == "__main__":
    key = jax.random.PRNGKey(0)
    k_cust, k_prod, k_e1s, k_e1d, k_e2s, k_e2d = jax.random.split(key, 6)

    n_customer, n_product = 20, 30
    n_edges_1, n_edges_2 = 4500, 64   # 4500 exercises the 2-step + index-pad path

    # Node hidden states. "session" is deliberately absent -> etypes touching it are
    # skipped, exactly like the KeyError branch in the PyTorch module.
    h = {
        "customer": jax.random.normal(k_cust, (n_customer, EMBED_DIM), jnp.float32),
        "product": jax.random.normal(k_prod, (n_product, EMBED_DIM), jnp.float32),
    }

    graph = {
        "canonical_etypes": [
            ("customer", "buys", "product"),
            ("product", "bought-by", "customer"),
            ("customer", "visits", "session"),   # skipped (no h["session"])
        ],
        "edges": {
            ("customer", "buys", "product"): (
                jax.random.randint(k_e1s, (n_edges_1,), 0, n_customer),
                jax.random.randint(k_e1d, (n_edges_1,), 0, n_product),
            ),
            ("product", "bought-by", "customer"): (
                jax.random.randint(k_e2s, (n_edges_2,), 0, n_product),
                jax.random.randint(k_e2d, (n_edges_2,), 0, n_customer),
            ),
            ("customer", "visits", "session"): (
                jnp.zeros((8,), jnp.int32),
                jnp.zeros((8,), jnp.int32),
            ),
        },
    }

    ratings = cosine_prediction(graph, h)
    ratings = jax.block_until_ready(ratings)

    # Pure-JAX reference: F.normalize(p=2, dim=-1) on both sides, then per-edge dot.
    def ref_cos(heads, tails):
        hn = heads / jnp.maximum(jnp.linalg.norm(heads, axis=-1, keepdims=True), 1e-12)
        tn = tails / jnp.maximum(jnp.linalg.norm(tails, axis=-1, keepdims=True), 1e-12)
        return jnp.sum(hn * tn, axis=-1, keepdims=True)

    assert set(ratings.keys()) == {("customer", "buys", "product"),
                                   ("product", "bought-by", "customer")}
    for etype, r in ratings.items():
        src_nid, dst_nid = graph["edges"][etype]
        utype, _, vtype = etype
        expect = ref_cos(jnp.take(h[utype], src_nid, axis=0),
                         jnp.take(h[vtype], dst_nid, axis=0))
        assert r.shape == (src_nid.shape[0], 1)
        assert bool(jnp.all(jnp.abs(r - expect) < 1e-5))
        assert bool(jnp.all((r >= -1.0 - 1e-6) & (r <= 1.0 + 1e-6)))

    print("KERNEL_OK")
</pallas_src>

<mosaic_0001>
module attributes {stable_mosaic.version = 11 : i64} {
  func.func @_l2_normalize_kernel(%arg0: i32, %arg1: memref<24x16xf32, #tpu.memory_space<vmem>>, %arg2: memref<24x16xf32, #tpu.memory_space<vmem>>) attributes {dimension_semantics = [#tpu.dimension_semantics<parallel>], iteration_bounds = array<i64: 1>, scalar_prefetch = 0 : i64, scratch_operands = 0 : i64, tpu.core_type = #tpu.core_type<tc>, window_params = [{transform_indices = @transform_0, window_bounds = array<i64: 24, 16>}, {transform_indices = @transform_1, window_bounds = array<i64: 24, 16>}]} {
    %c0 = arith.constant 0 : index
    %c0_0 = arith.constant 0 : index
    %0 = vector.load %arg1[%c0, %c0_0] : memref<24x16xf32, #tpu.memory_space<vmem>>, vector<24x16xf32>
    %1 = arith.mulf %0, %0 : vector<24x16xf32>
    %cst = arith.constant dense<0.000000e+00> : vector<24xf32>
    %2 = vector.multi_reduction <add>, %1, %cst [1] : vector<24x16xf32> to vector<24xf32>
    %3 = vector.shape_cast %2 : vector<24xf32> to vector<24x1xf32>
    %4 = math.sqrt %3 : vector<24x1xf32>
    %cst_1 = arith.constant 9.99999996E-13 : f32
    %5 = vector.broadcast %cst_1 : f32 to vector<24x1xf32>
    %6 = arith.maximumf %4, %5 : vector<24x1xf32>
    %7 = vector.broadcast %6 : vector<24x1xf32> to vector<24x16xf32>
    %8 = arith.divf %0, %7 : vector<24x16xf32>
    %c0_2 = arith.constant 0 : index
    %c0_3 = arith.constant 0 : index
    %9 = vector.load %arg2[%c0_2, %c0_3] : memref<24x16xf32, #tpu.memory_space<vmem>>, vector<24x16xf32>
    tpu.vector_store %arg2[%c0_2, %c0_3], %8 {strides = array<i32>} : memref<24x16xf32, #tpu.memory_space<vmem>>, vector<24x16xf32>,
    return
  }
  func.func @transform_0(%arg0: i32) -> (i32, i32) {
    %c0_i32 = arith.constant 0 : i32
    %c0_i32_0 = arith.constant 0 : i32
    return %arg0, %c0_i32 : i32, i32
  }
  func.func @transform_1(%arg0: i32) -> (i32, i32) {
    %c0_i32 = arith.constant 0 : i32
    %c0_i32_0 = arith.constant 0 : i32
    return %arg0, %c0_i32 : i32, i32
  }
}

</mosaic_0001>

<bundles_post_ra>
// kernel: l2_normalize_nodes.1
= control target key start
LH: loop header
LB: loop body
LE: loop exit
PB: predicated region body
PF: predicated region fallthrough
CT: control target
= control target key end

     0   :  { %vm14_vm0 = vcmask 130048   ;;  %s176_s0 = inlined_call_operand.vmem [shape: f32[24,16], index: 0, kind: input, shape index: {}]   ;;  %s177_s1 = inlined_call_operand.vmem [shape: f32[24,16], index: 1, kind: output, shape index: {}]  }
   0x1   :  { %v140_v0 = vld [vmem:[%s176_s0 + $0x10] sm:$0xff]  ;;  %v145_v1 = vld [vmem:[%s176_s0] sm:$0xff]  ;;  %v154_v4 = vld [vmem:[%s176_s0 + $0x8] sm:$0xff] }
   0x2   :  { %v13_v2 = vmul.f32 %v140_v0, %v140_v0  ;;  %v11_v3 = vmul.f32 %v145_v1, %v145_v1  ;;  %v12_v7 = vmul.f32 %v154_v4, %v154_v4 }
   0x4   :  { %v21_v5 = vsel %vm14_vm0, %v13_v2, 0.0  ;;  %v15_v6 = vsel %vm14_vm0, %v11_v3, 0.0  ;;  %v18_v8 = vsel %vm14_vm0, %v12_v7, 0.0 }
   0x5   :  { %22 = vadd.xlane.f32.xlu1 %v21_v5  ;;  %16 = vadd.xlane.f32.xlu0 %v15_v6 }
   0xd   :  { %19 = vadd.xlane.f32.xlu0 %v18_v8 }
  0x78   :  { %v23_v9 = vpop.xlane.xlu1 %22  ;;  %v17_v10 = vpop.xlane.xlu0 %16 }
  0x79   :  { %115 = vrsqrt.f32 %v23_v9  ;;  %vm55_vm1 = vcmp.eq.f32.partialorder %v23_v9, inf  ;;  %vm57_vm2 = vcmp.eq.f32.partialorder %v23_v9, 0.0  ;;  %v58_v28 = vand.u32 2147483648, %v23_v9 }
  0x7a   :  { %117 = vrsqrt.f32 %v17_v10  ;;  %vm31_vm3 = vcmp.eq.f32.partialorder %v17_v10, inf  ;;  %v34_v31 = vand.u32 2147483648, %v17_v10  ;;  %vm33_vm4 = vcmp.eq.f32.partialorder %v17_v10, 0.0 }
  0x7f   :  { %v116_v11 = vpop.eup %115 }
  0x80   :  { %v118_v12 = vpop.eup %117  ;;  %v49_v13 = vmul.f32 %v116_v11, %v23_v9  ;;  %v20_v14 = vpop.xlane.xlu0 %19 }
  0x81   :  { %v25_v15 = vmul.f32 %v118_v12, %v17_v10  ;;  %119 = vrsqrt.f32 %v20_v14  ;;  %vm43_vm5 = vcmp.eq.f32.partialorder %v20_v14, inf  ;;  %v46_v41 = vand.u32 2147483648, %v20_v14 }
  0x82   :  { %v50_v16 = vmul.f32 %v116_v11, %v49_v13  ;;  %vm45_vm6 = vcmp.eq.f32.partialorder %v20_v14, 0.0 }
  0x83   :  { %v26_v17 = vmul.f32 %v118_v12, %v25_v15 }
  0x84   :  { %v51_v18 = vmul.f32 0.5, %v50_v16 }
  0x85   :  { %v27_v19 = vmul.f32 0.5, %v26_v17 }
  0x86   :  { %v52_v20 = vsub.f32 1.5, %v51_v18 }
  0x87   :  { %v120_v21 = vpop.eup %119  ;;  %v28_v22 = vsub.f32 1.5, %v27_v19 }
  0x88   :  { %v53_v23 = vmul.f32 %v116_v11, %v52_v20  ;;  %v37_v24 = vmul.f32 %v120_v21, %v20_v14 }
  0x89   :  { %v29_v25 = vmul.f32 %v118_v12, %v28_v22 }
  0x8a   :  { %v54_v26 = vmul.f32 %v53_v23, %v23_v9  ;;  %v38_v27 = vmul.f32 %v120_v21, %v37_v24 }
  0x8b   :  { %v30_v29 = vmul.f32 %v29_v25, %v17_v10 }
  0x8c   :  { %v56_v30 = vsel %vm55_vm1, %v23_v9, %v54_v26  ;;  %v39_v32 = vmul.f32 0.5, %v38_v27 }
  0x8d   :  { %v59_v33 = vsel %vm57_vm2, %v58_v28, %v56_v30  ;;  %v32_v34 = vsel %vm31_vm3, %v17_v10, %v30_v29 }
  0x8e   :  { %v62_v35 = vmax.f32 %v59_v33, 1e-12  ;;  %v35_v36 = vsel %vm33_vm4, %v34_v31, %v32_v34  ;;  %v40_v37 = vsub.f32 1.5, %v39_v32 }
  0x8f   :  { %v60_v38 = vmax.f32 %v35_v36, 1e-12 }
  0x90   :  { %121 = vrcp.f32 %v62_v35  ;;  %v41_v39 = vmul.f32 %v120_v21, %v40_v37  ;;  %v104_v50 = vand.u32 2147483648, %v62_v35  ;;  %v102_v53 = vand.u32 2147483647, %v62_v35 }
  0x91   :  { %123 = vrcp.f32 %v60_v38  ;;  %v74_v54 = vand.u32 2147483648, %v60_v38  ;;  %v72_v56 = vand.u32 2147483647, %v60_v38  ;;  %vm98_vm9 = vweird.f32 %v62_v35 }
  0x92   :  { %v42_v40 = vmul.f32 %v41_v39, %v20_v14  ;;  %v105_v58 = vor.u32 1.1754944e-38, %v104_v50  ;;  %vm68_vm11 = vweird.f32 %v60_v38  ;;  %vm103_vm12 = vcmp.eq.f32.partialorder %v102_v53, 8.507059e+37 }
  0x93   :  { %v75_v61 = vor.u32 1.1754944e-38, %v74_v54  ;;  %vm73_vm14 = vcmp.eq.f32.partialorder %v72_v56, 8.507059e+37 }
  0x94   :  { %v44_v43 = vsel %vm43_vm5, %v20_v14, %v42_v40 }
  0x95   :  { %v47_v46 = vsel %vm45_vm6, %v46_v41, %v44_v43 }
  0x96   :  { %v122_v42 = vpop.eup %121  ;;  %v61_v48 = vmax.f32 %v47_v46, 1e-12 }
  0x97   :  { %v124_v44 = vpop.eup %123  ;;  %v94_v45 = vmul.f32 %v122_v42, %v62_v35  ;;  %vm99_vm7 = vweird.f32 %v122_v42 }
  0x98   :  { %v64_v47 = vmul.f32 %v124_v44, %v60_v38  ;;  %125 = vrcp.f32 %v61_v48  ;;  %vm69_vm8 = vweird.f32 %v124_v44  ;;  %vm100_vm10 = vmor %vm98_vm9, %vm99_vm7  ;;  %v89_v9 = vand.u32 2147483648, %v61_v48 }
  0x99   :  { %v95_v49 = vsub.f32 1.0, %v94_v45  ;;  %vm70_vm13 = vmor %vm68_vm11, %vm69_vm8  ;;  %v87_v11 = vand.u32 2147483647, %v61_v48  ;;  %vm83_vm1 = vweird.f32 %v61_v48 }
  0x9a   :  { %v65_v51 = vsub.f32 1.0, %v64_v47  ;;  %v90_v12 = vor.u32 1.1754944e-38, %v89_v9 }
  0x9b   :  { %v96_v52 = vmul.f32 %v122_v42, %v95_v49  ;;  %vm88_vm3 = vcmp.eq.f32.partialorder %v87_v11, 8.507059e+37 }
  0x9c   :  { %v66_v55 = vmul.f32 %v124_v44, %v65_v51 }
  0x9d   :  { %v97_v57 = vadd.f32 %v122_v42, %v96_v52 }
  0x9e   :  { %v67_v59 = vadd.f32 %v124_v44, %v66_v55  ;;  %v126_v62 = vpop.eup %125 }
  0x9f   :  { %v101_v60 = vsel %vm100_vm10, %v122_v42, %v97_v57  ;;  %v79_v6 = vmul.f32 %v126_v62, %v61_v48  ;;  %vm84_vm15 = vweird.f32 %v126_v62 }
  0xa0   :  { %v106_v63 = vsel %vm103_vm12, %v105_v58, %v101_v60  ;;  %v71_v2 = vsel %vm70_vm13, %v124_v44, %v67_v59  ;;  %vm85_vm2 = vmor %vm83_vm1, %vm84_vm15 }
  0xa1   :  { %v107_v3 = vmul.f32 %v106_v63, %v140_v0  ;;  %v76_v5 = vsel %vm73_vm14, %v75_v61, %v71_v2  ;;  %v80_v8 = vsub.f32 1.0, %v79_v6 }
  0xa2   :  { %v77_v7 = vmul.f32 %v76_v5, %v145_v1 }
  0xa3   :  { %110 = vst.msk [vmem:[%s177_s1 + $0x10] sm:$0xff] %vm14_vm0, %v107_v3  ;;  %v81_v10 = vmul.f32 %v126_v62, %v80_v8 }
  0xa4   :  { %108 = vst.msk [vmem:[%s177_s1] sm:$0xff] %vm14_vm0, %v77_v7 }
  0xa5   :  { %v82_v0 = vadd.f32 %v126_v62, %v81_v10 }
  0xa7   :  { %v86_v1 = vsel %vm85_vm2, %v126_v62, %v82_v0 }
  0xa8   :  { %v91_v13 = vsel %vm88_vm3, %v90_v12, %v86_v1 }
  0xa9   :  { %v92_v14 = vmul.f32 %v91_v13, %v154_v4 }
  0xab   :  { %109 = vst.msk [vmem:[%s177_s1 + $0x8] sm:$0xff] %vm14_vm0, %v92_v14 }

</bundles_post_ra>
